<compile_context>
chip_gen: v5e
topology: v5e:2x2
jax: 0.10.0
libtpu: 0.0.40
codegen_flags: <defaults>
</compile_context>

<pallas_src>
import functools
import math

import jax
import jax.numpy as jnp
from jax import lax
from jax.experimental import pallas as pl
from jax.experimental.pallas import tpu as pltpu


_MASK_LOGIT = -1e9  # masked lanes: logit -> -1e9, gt -> 0 zeroes every summand


def _lane_partial(x, acc_l):
    """Fold (rows, ck) down to (rows, acc_l) with VPU adds only (no XLU)."""
    ck = x.shape[1]
    if ck == acc_l:
        return x
    out = x[:, :acc_l]
    for j in range(1, ck // acc_l):
        out = out + x[:, j * acc_l:(j + 1) * acc_l]
    return out


# ----------------------------------------------------------------------------
# Kernel: accumulate 7 lane-parallel partial sums per row block, finalize once.
# ----------------------------------------------------------------------------
def _sam_stats_kernel(pred_ref, gt_ref, out_ref, acc_ref, *,
                      alpha, gamma, tl, ck, acc_l, l_valid, mask_needed, nt,
                      binary_gt):
    k = pl.program_id(1)               # lane-tile (reduction) axis, innermost
    nchunk = tl // ck

    @pl.when(k == 0)
    def _init():
        acc_ref[...] = jnp.zeros_like(acc_ref)

    def chunk_body(j, carry, *, masked):
        if nchunk == 1:
            p = pred_ref[...].astype(jnp.float32)
            g = gt_ref[...].astype(jnp.float32)
            base = k * tl
        else:
            j0 = pl.multiple_of(j * ck, ck)
            p = pred_ref[:, pl.ds(j0, ck)].astype(jnp.float32)
            g = gt_ref[:, pl.ds(j0, ck)].astype(jnp.float32)
            base = k * tl + j0
        if masked:
            # Only the ragged last tile pays for the mask.
            lane = lax.broadcasted_iota(jnp.int32, p.shape, 1)
            valid = (base + lane) < l_valid
            p = jnp.where(valid, p, _MASK_LOGIT)
            g = jnp.where(valid, g, 0.0)

        # One exp + one log + one reciprocal per element; sigmoid and the
        # stable-BCE softplus share exp(-|x|).
        e = jnp.exp(-jnp.abs(p))
        one_p_e = 1.0 + e
        softplus = jnp.log(one_p_e)
        inv = pl.reciprocal(one_p_e, approx=False)
        sig = jnp.where(p >= 0.0, inv, e * inv)          # exact sigmoid
        t = g * sig                                      # dice intersection
        # binary_cross_entropy_with_logits (PyTorch stable form):
        #   max(x, 0) - x*y + log(1 + exp(-|x|))
        ce = jnp.maximum(p, 0.0) - p * g + softplus
        one_m_pt = (g + sig) - 2.0 * t                   # == 1 - p_t
        if gamma == 2.0:
            mod = one_m_pt * one_m_pt
        else:
            # TODO(synk): for gamma <= 0 this path hits log(0) at p_t == 1.
            mod = one_m_pt ** gamma
        alpha_t = (1.0 - alpha) + (2.0 * alpha - 1.0) * g
        focal_elem = (alpha_t * ce) * mod
        pr_b = (p > 0.0).astype(jnp.float32)
        gt_b = g if binary_gt else (g > 0.0).astype(jnp.float32)
        inter_b = gt_b * pr_b

        summands = (t, g, sig, focal_elem, inter_b, gt_b, pr_b)
        for i, s in enumerate(summands):
            acc_ref[i] = acc_ref[i] + _lane_partial(s, acc_l)
        return carry

    def process(masked):
        body = functools.partial(chunk_body, masked=masked)
        if nchunk == 1:
            body(0, 0)
        else:
            lax.fori_loop(0, nchunk, body, 0,
                          unroll=True if nchunk <= 8 else 2)

    if mask_needed:
        @pl.when(k < nt - 1)
        def _full_tiles():
            process(False)

        @pl.when(k == nt - 1)
        def _ragged_tile():
            process(True)
    else:
        process(False)

    @pl.when(k == nt - 1)
    def _finalize():
        # Single XLU cross-lane reduce + narrow store per row block.
        cols = [jnp.sum(acc_ref[i], axis=1, keepdims=True) for i in range(7)]
        out_ref[...] = jnp.concatenate(cols, axis=1)


# ----------------------------------------------------------------------------
# Wrapper: generation-aware tiling / grid setup.
# ----------------------------------------------------------------------------
def _vmem_capacity_bytes():
    cap = 64 * 1024 * 1024  # conservative fallback (v7x-sized) if query fails
    try:
        info = pltpu.get_tpu_info()
        cap = int(getattr(info, "vmem_capacity_bytes", cap))
    except Exception:
        pass
    return cap


def _pick_row_block(rows, cap):
    if rows <= cap:
        return rows
    if rows % 8 != 0:
        # TODO(synk): odd per-object length with a huge batch stays untiled on rows.
        return rows
    d = (cap // 8) * 8
    while d >= 8:
        if rows % d == 0:
            return d
        d -= 8
    return rows


def _compute_stats(pred2d, gt2d, *, alpha, gamma, binary_gt=False):
    """pred2d, gt2d: (B, L) any float/int/bool dtype.  Returns (B, 7) f32 sums."""
    B, L = pred2d.shape

    # Fold part of L into the row axis so every vreg sublane carries data.
    if L % 16 == 0:
        S = 16
    elif L % 8 == 0:
        S = 8
    else:
        S = 1
    rows = B * S
    lcl = L // S
    pred2d = pred2d.reshape(rows, lcl)      # layout-compatible, no HBM copy
    gt2d = gt2d.reshape(rows, lcl)

    # Generation-aware budgets: v7x = 64 MiB VMEM / 2 TCs; v5e/v6e = 128 MiB / 1 TC.
    small_vmem = _vmem_capacity_bytes() < 100 * 1024 * 1024
    if small_vmem:                           # v7x-like
        input_budget = 12 * 1024 * 1024
        vmem_limit = 44 * 1024 * 1024
        row_cap = 256
    else:                                    # v5e / v6e (and fallback-safe)
        input_budget = 24 * 1024 * 1024
        vmem_limit = 88 * 1024 * 1024
        row_cap = 512

    # Row blocking (bounds chunk temporaries); force >= 2 row blocks only on
    # v7x so the "parallel" axis can shard across both TensorCores.
    cap = row_cap
    if small_vmem and rows % 16 == 0 and rows // 2 < cap:
        cap = max(8, rows // 2)
    rows_blk = _pick_row_block(rows, cap)
    n_rb = rows // rows_blk

    # In-kernel compute chunk (lane axis): keeps f32 temporaries chunk-sized.
    if lcl < 128:
        ck = lcl
    else:
        ck = min(1024, (lcl // 128) * 128)
    acc_l = 128 if (ck >= 128 and ck % 128 == 0) else ck

    # DMA (BlockSpec) tile: sized against double-buffered inputs using their
    # real itemsizes (bf16/int8 gt masks are welcome; kernel upcasts in VMEM).
    itemsize = pred2d.dtype.itemsize + gt2d.dtype.itemsize
    if lcl <= ck:
        tl = lcl
    else:
        lanes = input_budget // (2 * rows_blk * itemsize)   # 2 = double buffer
        tl = max(ck, (lanes // ck) * ck)
        tl = min(tl, max(ck, (lcl // ck) * ck))              # last block starts in-bounds
    nt = pl.cdiv(lcl, tl)
    mask_needed = (lcl % tl) != 0

    kernel = functools.partial(
        _sam_stats_kernel, alpha=alpha, gamma=gamma, tl=tl, ck=ck, acc_l=acc_l,
        l_valid=lcl, mask_needed=mask_needed, nt=nt, binary_gt=binary_gt)

    out = pl.pallas_call(
        kernel,
        out_shape=jax.ShapeDtypeStruct((rows, 7), jnp.float32),
        grid_spec=pltpu.PrefetchScalarGridSpec(
            num_scalar_prefetch=0,
            grid=(n_rb, nt),
            in_specs=[
                pl.BlockSpec((rows_blk, tl), lambda r, k: (r, k)),
                pl.BlockSpec((rows_blk, tl), lambda r, k: (r, k)),
            ],
            out_specs=pl.BlockSpec((rows_blk, 7), lambda r, k: (r, 0)),
            scratch_shapes=[pltpu.VMEM((7, rows_blk, acc_l), jnp.float32)],
        ),
        compiler_params=pltpu.CompilerParams(
            dimension_semantics=("parallel", "arbitrary"),
            vmem_limit_bytes=vmem_limit,
        ),
    )(pred2d, gt2d)

    # Combine folded-row partials back to per-object sums (tiny XLA op).
    return out.reshape(B, S, 7).sum(axis=1)


# ----------------------------------------------------------------------------
# SAM_Loss forward (scalar glue in plain JAX, hot reductions in the kernel).
# ----------------------------------------------------------------------------
def sam_loss(best_pred, gt_mask, pred_iou, *, focal_weight=20.0, dice_weight=1.0,
             iou_weight=1.0, alpha=0.25, gamma=2.0, is_sam2_loss=False,
             gt_is_binary=False):
    B = best_pred.shape[0]
    # PyTorch focal_loss does loss.mean(dim=1).sum()/B on the UNflattened
    # tensor -> the divisor is shape[1], not the full pixel count.
    N = best_pred.shape[1]
    L = math.prod(best_pred.shape[1:])

    pred2d = best_pred.reshape(B, L)       # no dtype cast here (done in-kernel)
    gt2d = gt_mask.reshape(B, L)
    pred_iou = pred_iou.astype(jnp.float32)

    stats = _compute_stats(pred2d, gt2d, alpha=alpha, gamma=gamma,
                           binary_gt=gt_is_binary)
    inter_d, s_gt, s_sig, s_focal, inter_b, s_gt_b, s_pr_b = (
        stats[:, i] for i in range(7))

    # dice_loss
    dice = jnp.sum(1.0 - (2.0 * inter_d + 1.0) / (s_gt + s_sig + 1.0)) / B
    # focal_loss: loss.mean(dim=1).sum() / B == total_sum / N / B
    focal = jnp.sum(s_focal) / N / B
    # iou_loss
    union = jnp.maximum(s_gt_b + s_pr_b - inter_b, 1.0)
    ious = inter_b / (union + 1e-6)
    if is_sam2_loss:
        iou = jnp.sum(jnp.abs(pred_iou - ious)) / B
    else:
        iou = jnp.sum((pred_iou - ious) ** 2) / B

    total = focal_weight * focal + dice_weight * dice + iou_weight * iou
    return total, {"focal": focal, "dice": dice, "iou": iou}


# ----------------------------------------------------------------------------
# Pure-JAX reference mirroring the PyTorch code literally (verification only).
# ----------------------------------------------------------------------------
def _reference(best_pred, gt_mask, pred_iou, *, focal_weight=20.0, dice_weight=1.0,
               iou_weight=1.0, alpha=0.25, gamma=2.0, is_sam2_loss=False):
    B = best_pred.shape[0]
    x = best_pred.astype(jnp.float32)
    y = gt_mask.astype(jnp.float32)

    proba = jax.nn.sigmoid(x)
    ce = jnp.maximum(x, 0.0) - x * y + jnp.log(1.0 + jnp.exp(-jnp.abs(x)))
    p_t = proba * y + (1 - proba) * (1 - y)
    loss = ce * (1 - p_t) ** gamma
    alpha_t = alpha * y + (1 - alpha) * (1 - y)
    loss = alpha_t * loss
    focal = jnp.sum(jnp.mean(loss, axis=1)) / B

    yt = y.reshape(B, -1)
    yp = proba.reshape(B, -1)
    inter = jnp.sum(yt * yp, axis=1)
    dice = jnp.sum(
        1 - (2 * inter + 1) / (jnp.sum(yt, axis=1) + jnp.sum(yp, axis=1) + 1)) / B

    ytb = (y.reshape(B, -1) > 0.0).astype(jnp.float32)
    ypb = (x.reshape(B, -1) > 0.0).astype(jnp.float32)
    ib = jnp.sum(ytb * ypb, axis=1)
    un = jnp.maximum(jnp.sum(ytb, axis=1) + jnp.sum(ypb, axis=1) - ib, 1.0)
    ious = ib / (un + 1e-6)
    if is_sam2_loss:
        iou = jnp.sum(jnp.abs(pred_iou - ious)) / B
    else:
        iou = jnp.sum((pred_iou - ious) ** 2) / B

    return focal_weight * focal + dice_weight * dice + iou_weight * iou


if __name__ == "__main__":
    key = jax.random.PRNGKey(0)

    # Case 1: small SAM-like shapes (single tile, no masking path).
    k1, k2, k3, key = jax.random.split(key, 4)
    B, N, H, W = 2, 3, 16, 16
    best_pred = 2.0 * jax.random.normal(k1, (B, N, H, W), dtype=jnp.float32)
    gt_mask = (jax.random.uniform(k2, (B, N, H, W)) > 0.5).astype(jnp.float32)
    pred_iou = jax.random.uniform(k3, (B,), dtype=jnp.float32)

    total1, _ = sam_loss(best_pred, gt_mask, pred_iou)
    total1 = jax.block_until_ready(total1)
    ref1 = jax.block_until_ready(_reference(best_pred, gt_mask, pred_iou))
    assert jnp.allclose(total1, ref1, rtol=1e-4, atol=1e-5), (total1, ref1)

    # Case 2: larger mask -> exercises multi-tile + chunk loop + ragged mask.
    k1, k2, k3, key = jax.random.split(key, 4)
    B2, N2, H2, W2 = 2, 1, 192, 192
    best_pred2 = 2.0 * jax.random.normal(k1, (B2, N2, H2, W2), dtype=jnp.float32)
    gt_mask2 = (jax.random.uniform(k2, (B2, N2, H2, W2)) > 0.5).astype(jnp.float32)
    pred_iou2 = jax.random.uniform(k3, (B2,), dtype=jnp.float32)

    total2, _ = sam_loss(best_pred2, gt_mask2, pred_iou2, is_sam2_loss=True)
    total2 = jax.block_until_ready(total2)
    ref2 = jax.block_until_ready(
        _reference(best_pred2, gt_mask2, pred_iou2, is_sam2_loss=True))
    assert jnp.allclose(total2, ref2, rtol=1e-4, atol=1e-5), (total2, ref2)

    print("KERNEL_OK")
</pallas_src>

<mosaic_0001>
module attributes {stable_mosaic.version = 11 : i64} {
  func.func @_sam_stats_kernel(%arg0: i32, %arg1: i32, %arg2: memref<16x48xf32, #tpu.memory_space<vmem>>, %arg3: memref<16x48xf32, #tpu.memory_space<vmem>>, %arg4: memref<16x7xf32, #tpu.memory_space<vmem>>, %arg5: memref<7x16x48xf32, #tpu.memory_space<vmem>>) attributes {dimension_semantics = [#tpu.dimension_semantics<parallel>, #tpu.dimension_semantics<arbitrary>], iteration_bounds = array<i64: 2, 1>, scalar_prefetch = 0 : i64, scratch_operands = 1 : i64, tpu.core_type = #tpu.core_type<tc>, window_params = [{transform_indices = @transform_0, window_bounds = array<i64: 16, 48>}, {transform_indices = @transform_1, window_bounds = array<i64: 16, 48>}, {transform_indices = @transform_2, window_bounds = array<i64: 16, 7>}]} {
    %c0_i32 = arith.constant 0 : i32
    %0 = arith.cmpi eq, %arg1, %c0_i32 : i32
    %1 = arith.extui %0 : i1 to i32
    %c0_i32_0 = arith.constant 0 : i32
    %2 = arith.cmpi ne, %1, %c0_i32_0 : i32
    scf.if %2 {
      %cst_50 = arith.constant 0.000000e+00 : f32
      %88 = vector.broadcast %cst_50 : f32 to vector<7x16x48xf32>
      %c0_51 = arith.constant 0 : index
      %c0_52 = arith.constant 0 : index
      %c0_53 = arith.constant 0 : index
      %89 = vector.load %arg5[%c0_51, %c0_52, %c0_53] : memref<7x16x48xf32, #tpu.memory_space<vmem>>, vector<7x16x48xf32>
      tpu.vector_store %arg5[%c0_51, %c0_52, %c0_53], %88 {strides = array<i32>} : memref<7x16x48xf32, #tpu.memory_space<vmem>>, vector<7x16x48xf32>,
    } else {
    }
    %c0 = arith.constant 0 : index
    %c0_1 = arith.constant 0 : index
    %3 = vector.load %arg2[%c0, %c0_1] : memref<16x48xf32, #tpu.memory_space<vmem>>, vector<16x48xf32>
    %c0_2 = arith.constant 0 : index
    %c0_3 = arith.constant 0 : index
    %4 = vector.load %arg3[%c0_2, %c0_3] : memref<16x48xf32, #tpu.memory_space<vmem>>, vector<16x48xf32>
    %5 = math.absf %3 : vector<16x48xf32>
    %cst = arith.constant 0.000000e+00 : f32
    %6 = vector.broadcast %cst : f32 to vector<16x48xf32>
    %7 = arith.subf %6, %5 : vector<16x48xf32>
    %8 = math.exp %7 : vector<16x48xf32>
    %cst_4 = arith.constant 1.000000e+00 : f32
    %9 = vector.broadcast %cst_4 : f32 to vector<16x48xf32>
    %10 = arith.addf %9, %8 : vector<16x48xf32>
    %11 = math.log %10 : vector<16x48xf32>
    %12 = tpu.reciprocal %10 : vector<16x48xf32> -> vector<16x48xf32>
    %cst_5 = arith.constant 0.000000e+00 : f32
    %13 = vector.broadcast %cst_5 : f32 to vector<16x48xf32>
    %14 = arith.cmpf oge, %3, %13 : vector<16x48xf32>
    %15 = arith.mulf %8, %12 : vector<16x48xf32>
    %16 = arith.select %14, %12, %15 : vector<16x48xi1>, vector<16x48xf32>
    %17 = arith.mulf %4, %16 : vector<16x48xf32>
    %cst_6 = arith.constant 0.000000e+00 : f32
    %18 = vector.broadcast %cst_6 : f32 to vector<16x48xf32>
    %19 = arith.maximumf %3, %18 : vector<16x48xf32>
    %20 = arith.mulf %3, %4 : vector<16x48xf32>
    %21 = arith.subf %19, %20 : vector<16x48xf32>
    %22 = arith.addf %21, %11 : vector<16x48xf32>
    %23 = arith.addf %4, %16 : vector<16x48xf32>
    %cst_7 = arith.constant 2.000000e+00 : f32
    %24 = vector.broadcast %cst_7 : f32 to vector<16x48xf32>
    %25 = arith.mulf %24, %17 : vector<16x48xf32>
    %26 = arith.subf %23, %25 : vector<16x48xf32>
    %27 = arith.mulf %26, %26 : vector<16x48xf32>
    %cst_8 = arith.constant -5.000000e-01 : f32
    %28 = vector.broadcast %cst_8 : f32 to vector<16x48xf32>
    %29 = arith.mulf %28, %4 : vector<16x48xf32>
    %cst_9 = arith.constant 7.500000e-01 : f32
    %30 = vector.broadcast %cst_9 : f32 to vector<16x48xf32>
    %31 = arith.addf %30, %29 : vector<16x48xf32>
    %32 = arith.mulf %31, %22 : vector<16x48xf32>
    %33 = arith.mulf %32, %27 : vector<16x48xf32>
    %cst_10 = arith.constant 0.000000e+00 : f32
    %34 = vector.broadcast %cst_10 : f32 to vector<16x48xf32>
    %35 = arith.cmpf ogt, %3, %34 : vector<16x48xf32>
    %36 = arith.extui %35 : vector<16x48xi1> to vector<16x48xi32>
    %37 = arith.sitofp %36 : vector<16x48xi32> to vector<16x48xf32>
    %cst_11 = arith.constant 0.000000e+00 : f32
    %38 = vector.broadcast %cst_11 : f32 to vector<16x48xf32>
    %39 = arith.cmpf ogt, %4, %38 : vector<16x48xf32>
    %40 = arith.extui %39 : vector<16x48xi1> to vector<16x48xi32>
    %41 = arith.sitofp %40 : vector<16x48xi32> to vector<16x48xf32>
    %42 = arith.mulf %41, %37 : vector<16x48xf32>
    %c0_12 = arith.constant 0 : index
    %c0_13 = arith.constant 0 : index
    %c0_14 = arith.constant 0 : index
    %43 = vector.load %arg5[%c0_12, %c0_13, %c0_14] : memref<7x16x48xf32, #tpu.memory_space<vmem>>, vector<1x16x48xf32>
    %44 = vector.shape_cast %43 : vector<1x16x48xf32> to vector<16x48xf32>
    %45 = arith.addf %44, %17 : vector<16x48xf32>
    %c0_15 = arith.constant 0 : index
    %c0_16 = arith.constant 0 : index
    %c0_17 = arith.constant 0 : index
    %46 = vector.load %arg5[%c0_15, %c0_16, %c0_17] : memref<7x16x48xf32, #tpu.memory_space<vmem>>, vector<1x16x48xf32>
    %47 = vector.shape_cast %46 : vector<1x16x48xf32> to vector<16x48xf32>
    %48 = vector.shape_cast %45 : vector<16x48xf32> to vector<1x16x48xf32>
    tpu.vector_store %arg5[%c0_15, %c0_16, %c0_17], %48 {strides = array<i32>} : memref<7x16x48xf32, #tpu.memory_space<vmem>>, vector<1x16x48xf32>,
    %c1 = arith.constant 1 : index
    %c0_18 = arith.constant 0 : index
    %c0_19 = arith.constant 0 : index
    %49 = vector.load %arg5[%c1, %c0_18, %c0_19] : memref<7x16x48xf32, #tpu.memory_space<vmem>>, vector<1x16x48xf32>
    %50 = vector.shape_cast %49 : vector<1x16x48xf32> to vector<16x48xf32>
    %51 = arith.addf %50, %4 : vector<16x48xf32>
    %c1_20 = arith.constant 1 : index
    %c0_21 = arith.constant 0 : index
    %c0_22 = arith.constant 0 : index
    %52 = vector.load %arg5[%c1_20, %c0_21, %c0_22] : memref<7x16x48xf32, #tpu.memory_space<vmem>>, vector<1x16x48xf32>
    %53 = vector.shape_cast %52 : vector<1x16x48xf32> to vector<16x48xf32>
    %54 = vector.shape_cast %51 : vector<16x48xf32> to vector<1x16x48xf32>
    tpu.vector_store %arg5[%c1_20, %c0_21, %c0_22], %54 {strides = array<i32>} : memref<7x16x48xf32, #tpu.memory_space<vmem>>, vector<1x16x48xf32>,
    %c2 = arith.constant 2 : index
    %c0_23 = arith.constant 0 : index
    %c0_24 = arith.constant 0 : index
    %55 = vector.load %arg5[%c2, %c0_23, %c0_24] : memref<7x16x48xf32, #tpu.memory_space<vmem>>, vector<1x16x48xf32>
    %56 = vector.shape_cast %55 : vector<1x16x48xf32> to vector<16x48xf32>
    %57 = arith.addf %56, %16 : vector<16x48xf32>
    %c2_25 = arith.constant 2 : index
    %c0_26 = arith.constant 0 : index
    %c0_27 = arith.constant 0 : index
    %58 = vector.load %arg5[%c2_25, %c0_26, %c0_27] : memref<7x16x48xf32, #tpu.memory_space<vmem>>, vector<1x16x48xf32>
    %59 = vector.shape_cast %58 : vector<1x16x48xf32> to vector<16x48xf32>
    %60 = vector.shape_cast %57 : vector<16x48xf32> to vector<1x16x48xf32>
    tpu.vector_store %arg5[%c2_25, %c0_26, %c0_27], %60 {strides = array<i32>} : memref<7x16x48xf32, #tpu.memory_space<vmem>>, vector<1x16x48xf32>,
    %c3 = arith.constant 3 : index
    %c0_28 = arith.constant 0 : index
    %c0_29 = arith.constant 0 : index
    %61 = vector.load %arg5[%c3, %c0_28, %c0_29] : memref<7x16x48xf32, #tpu.memory_space<vmem>>, vector<1x16x48xf32>
    %62 = vector.shape_cast %61 : vector<1x16x48xf32> to vector<16x48xf32>
    %63 = arith.addf %62, %33 : vector<16x48xf32>
    %c3_30 = arith.constant 3 : index
    %c0_31 = arith.constant 0 : index
    %c0_32 = arith.constant 0 : index
    %64 = vector.load %arg5[%c3_30, %c0_31, %c0_32] : memref<7x16x48xf32, #tpu.memory_space<vmem>>, vector<1x16x48xf32>
    %65 = vector.shape_cast %64 : vector<1x16x48xf32> to vector<16x48xf32>
    %66 = vector.shape_cast %63 : vector<16x48xf32> to vector<1x16x48xf32>
    tpu.vector_store %arg5[%c3_30, %c0_31, %c0_32], %66 {strides = array<i32>} : memref<7x16x48xf32, #tpu.memory_space<vmem>>, vector<1x16x48xf32>,
    %c4 = arith.constant 4 : index
    %c0_33 = arith.constant 0 : index
    %c0_34 = arith.constant 0 : index
    %67 = vector.load %arg5[%c4, %c0_33, %c0_34] : memref<7x16x48xf32, #tpu.memory_space<vmem>>, vector<1x16x48xf32>
    %68 = vector.shape_cast %67 : vector<1x16x48xf32> to vector<16x48xf32>
    %69 = arith.addf %68, %42 : vector<16x48xf32>
    %c4_35 = arith.constant 4 : index
    %c0_36 = arith.constant 0 : index
    %c0_37 = arith.constant 0 : index
    %70 = vector.load %arg5[%c4_35, %c0_36, %c0_37] : memref<7x16x48xf32, #tpu.memory_space<vmem>>, vector<1x16x48xf32>
    %71 = vector.shape_cast %70 : vector<1x16x48xf32> to vector<16x48xf32>
    %72 = vector.shape_cast %69 : vector<16x48xf32> to vector<1x16x48xf32>
    tpu.vector_store %arg5[%c4_35, %c0_36, %c0_37], %72 {strides = array<i32>} : memref<7x16x48xf32, #tpu.memory_space<vmem>>, vector<1x16x48xf32>,
    %c5 = arith.constant 5 : index
    %c0_38 = arith.constant 0 : index
    %c0_39 = arith.constant 0 : index
    %73 = vector.load %arg5[%c5, %c0_38, %c0_39] : memref<7x16x48xf32, #tpu.memory_space<vmem>>, vector<1x16x48xf32>
    %74 = vector.shape_cast %73 : vector<1x16x48xf32> to vector<16x48xf32>
    %75 = arith.addf %74, %41 : vector<16x48xf32>
    %c5_40 = arith.constant 5 : index
    %c0_41 = arith.constant 0 : index
    %c0_42 = arith.constant 0 : index
    %76 = vector.load %arg5[%c5_40, %c0_41, %c0_42] : memref<7x16x48xf32, #tpu.memory_space<vmem>>, vector<1x16x48xf32>
    %77 = vector.shape_cast %76 : vector<1x16x48xf32> to vector<16x48xf32>
    %78 = vector.shape_cast %75 : vector<16x48xf32> to vector<1x16x48xf32>
    tpu.vector_store %arg5[%c5_40, %c0_41, %c0_42], %78 {strides = array<i32>} : memref<7x16x48xf32, #tpu.memory_space<vmem>>, vector<1x16x48xf32>,
    %c6 = arith.constant 6 : index
    %c0_43 = arith.constant 0 : index
    %c0_44 = arith.constant 0 : index
    %79 = vector.load %arg5[%c6, %c0_43, %c0_44] : memref<7x16x48xf32, #tpu.memory_space<vmem>>, vector<1x16x48xf32>
    %80 = vector.shape_cast %79 : vector<1x16x48xf32> to vector<16x48xf32>
    %81 = arith.addf %80, %37 : vector<16x48xf32>
    %c6_45 = arith.constant 6 : index
    %c0_46 = arith.constant 0 : index
    %c0_47 = arith.constant 0 : index
    %82 = vector.load %arg5[%c6_45, %c0_46, %c0_47] : memref<7x16x48xf32, #tpu.memory_space<vmem>>, vector<1x16x48xf32>
    %83 = vector.shape_cast %82 : vector<1x16x48xf32> to vector<16x48xf32>
    %84 = vector.shape_cast %81 : vector<16x48xf32> to vector<1x16x48xf32>
    tpu.vector_store %arg5[%c6_45, %c0_46, %c0_47], %84 {strides = array<i32>} : memref<7x16x48xf32, #tpu.memory_space<vmem>>, vector<1x16x48xf32>,
    %c0_i32_48 = arith.constant 0 : i32
    %85 = arith.cmpi eq, %arg1, %c0_i32_48 : i32
    %86 = arith.extui %85 : i1 to i32
    %c0_i32_49 = arith.constant 0 : i32
    %87 = arith.cmpi ne, %86, %c0_i32_49 : i32
    scf.if %87 {
      %c0_50 = arith.constant 0 : index
      %c0_51 = arith.constant 0 : index
      %c0_52 = arith.constant 0 : index
      %88 = vector.load %arg5[%c0_50, %c0_51, %c0_52] : memref<7x16x48xf32, #tpu.memory_space<vmem>>, vector<1x16x48xf32>
      %89 = vector.shape_cast %88 : vector<1x16x48xf32> to vector<16x48xf32>
      %cst_53 = arith.constant dense<0.000000e+00> : vector<16xf32>
      %90 = vector.multi_reduction <add>, %89, %cst_53 [1] : vector<16x48xf32> to vector<16xf32>
      %91 = vector.shape_cast %90 : vector<16xf32> to vector<16x1xf32>
      %c1_54 = arith.constant 1 : index
      %c0_55 = arith.constant 0 : index
      %c0_56 = arith.constant 0 : index
      %92 = vector.load %arg5[%c1_54, %c0_55, %c0_56] : memref<7x16x48xf32, #tpu.memory_space<vmem>>, vector<1x16x48xf32>
      %93 = vector.shape_cast %92 : vector<1x16x48xf32> to vector<16x48xf32>
      %cst_57 = arith.constant dense<0.000000e+00> : vector<16xf32>
      %94 = vector.multi_reduction <add>, %93, %cst_57 [1] : vector<16x48xf32> to vector<16xf32>
      %95 = vector.shape_cast %94 : vector<16xf32> to vector<16x1xf32>
      %c2_58 = arith.constant 2 : index
      %c0_59 = arith.constant 0 : index
      %c0_60 = arith.constant 0 : index
      %96 = vector.load %arg5[%c2_58, %c0_59, %c0_60] : memref<7x16x48xf32, #tpu.memory_space<vmem>>, vector<1x16x48xf32>
      %97 = vector.shape_cast %96 : vector<1x16x48xf32> to vector<16x48xf32>
      %cst_61 = arith.constant dense<0.000000e+00> : vector<16xf32>
      %98 = vector.multi_reduction <add>, %97, %cst_61 [1] : vector<16x48xf32> to vector<16xf32>
      %99 = vector.shape_cast %98 : vector<16xf32> to vector<16x1xf32>
      %c3_62 = arith.constant 3 : index
      %c0_63 = arith.constant 0 : index
      %c0_64 = arith.constant 0 : index
      %100 = vector.load %arg5[%c3_62, %c0_63, %c0_64] : memref<7x16x48xf32, #tpu.memory_space<vmem>>, vector<1x16x48xf32>
      %101 = vector.shape_cast %100 : vector<1x16x48xf32> to vector<16x48xf32>
      %cst_65 = arith.constant dense<0.000000e+00> : vector<16xf32>
      %102 = vector.multi_reduction <add>, %101, %cst_65 [1] : vector<16x48xf32> to vector<16xf32>
      %103 = vector.shape_cast %102 : vector<16xf32> to vector<16x1xf32>
      %c4_66 = arith.constant 4 : index
      %c0_67 = arith.constant 0 : index
      %c0_68 = arith.constant 0 : index
      %104 = vector.load %arg5[%c4_66, %c0_67, %c0_68] : memref<7x16x48xf32, #tpu.memory_space<vmem>>, vector<1x16x48xf32>
      %105 = vector.shape_cast %104 : vector<1x16x48xf32> to vector<16x48xf32>
      %cst_69 = arith.constant dense<0.000000e+00> : vector<16xf32>
      %106 = vector.multi_reduction <add>, %105, %cst_69 [1] : vector<16x48xf32> to vector<16xf32>
      %107 = vector.shape_cast %106 : vector<16xf32> to vector<16x1xf32>
      %c5_70 = arith.constant 5 : index
      %c0_71 = arith.constant 0 : index
      %c0_72 = arith.constant 0 : index
      %108 = vector.load %arg5[%c5_70, %c0_71, %c0_72] : memref<7x16x48xf32, #tpu.memory_space<vmem>>, vector<1x16x48xf32>
      %109 = vector.shape_cast %108 : vector<1x16x48xf32> to vector<16x48xf32>
      %cst_73 = arith.constant dense<0.000000e+00> : vector<16xf32>
      %110 = vector.multi_reduction <add>, %109, %cst_73 [1] : vector<16x48xf32> to vector<16xf32>
      %111 = vector.shape_cast %110 : vector<16xf32> to vector<16x1xf32>
      %c6_74 = arith.constant 6 : index
      %c0_75 = arith.constant 0 : index
      %c0_76 = arith.constant 0 : index
      %112 = vector.load %arg5[%c6_74, %c0_75, %c0_76] : memref<7x16x48xf32, #tpu.memory_space<vmem>>, vector<1x16x48xf32>
      %113 = vector.shape_cast %112 : vector<1x16x48xf32> to vector<16x48xf32>
      %cst_77 = arith.constant dense<0.000000e+00> : vector<16xf32>
      %114 = vector.multi_reduction <add>, %113, %cst_77 [1] : vector<16x48xf32> to vector<16xf32>
      %115 = vector.shape_cast %114 : vector<16xf32> to vector<16x1xf32>
      %116 = tpu.concatenate %91, %95, %99, %103, %107, %111, %115 in 1 : vector<16x1xf32>, vector<16x1xf32>, vector<16x1xf32>, vector<16x1xf32>, vector<16x1xf32>, vector<16x1xf32>, vector<16x1xf32> -> vector<16x7xf32>
      %c0_78 = arith.constant 0 : index
      %c0_79 = arith.constant 0 : index
      %117 = vector.load %arg4[%c0_78, %c0_79] : memref<16x7xf32, #tpu.memory_space<vmem>>, vector<16x7xf32>
      tpu.vector_store %arg4[%c0_78, %c0_79], %116 {strides = array<i32>} : memref<16x7xf32, #tpu.memory_space<vmem>>, vector<16x7xf32>,
    } else {
    }
    return
  }
  func.func @transform_0(%arg0: i32, %arg1: i32) -> (i32, i32) {
    %c0_i32 = arith.constant 0 : i32
    return %arg0, %arg1 : i32, i32
  }
  func.func @transform_1(%arg0: i32, %arg1: i32) -> (i32, i32) {
    %c0_i32 = arith.constant 0 : i32
    return %arg0, %arg1 : i32, i32
  }
  func.func @transform_2(%arg0: i32, %arg1: i32) -> (i32, i32) {
    %c0_i32 = arith.constant 0 : i32
    %c0_i32_0 = arith.constant 0 : i32
    return %arg0, %c0_i32 : i32, i32
  }
}

</mosaic_0001>

<bundles_post_ra>
// kernel: tpu_custom_call.1
= control target key start
LH: loop header
LB: loop body
LE: loop exit
PB: predicated region body
PF: predicated region fallthrough
CT: control target
= control target key end

     0   :  { %7 = vsyncpa [#allocation4], 0  ;;  %s1004_s0 = inlined_call_operand.hbm [shape: f32[32,48], index: 0, kind: input, shape index: {}]   ;;  %s1005_s1 = inlined_call_operand.hbm [shape: f32[32,48], index: 1, kind: input, shape index: {}]   ;;  %s1006_s2 = inlined_call_operand.vmem [shape: f32[32,7], index: 2, kind: output, shape index: {}]  }
   0x1   :  { %9 = vsyncpa [#allocation4 + $0x1], 0 }
   0x2   :  { %10 = vsyncpa [#allocation6], 0 }
   0x3   :  { %12 = vsyncpa [#allocation6 + $0x1], 0  ;;  %s804_s9 = smov 0   ;;  %s806_s10 = smov 0  }
   0x4   :  { %s808_s11 = smov 0   ;;  %s810_s12 = smov 0  }
   0x5   :  { %s812_s13 = smov 0   ;;  %s814_s14 = smov 0  }
   0x6 LB: > { %s572_s15 = sadd.s32 4294967295, %s784_s14   ;;  %s30_s16 = sadd.s32 1, %s780_s13  ;;  %s784_s14 = sphi %s814_s14, %s18_s14   ;;  %s780_s13 = sphi %s812_s13, %s1018_s13   ;;  %s776_s12 = sphi %s810_s12, %s1017_s12   ;;  %s772_s11 = sphi %s808_s11, %s1016_s11   ;;  %s768_s10 = sphi %s806_s10, %s1015_s10   ;;  %s764_s9 = sphi %s804_s9, %s1014_s9  }
   0x7   : > { %p32_p0 = scmp.ge.s32.totalorder %s30_s16, 2  ;;  %s39_s17 = sadd.s32 1, %s772_s11 }
   0x8   : > { %p46_p1 = scmp.ne.s32.totalorder %s772_s11, %s768_s10  ;;  %p47_p2 = scmp.eq.s32.totalorder %s784_s14, 0 }
   0x9   : > { %s1020_s16 = smov (%p32_p0, %s30_s16), 0  ;;  %p52_p4 = scmp.ne.s32.totalorder %s768_s10, %s764_s9 }
   0xa   : > { %p840_p3 = por %p47_p2, %p46_p1  ;;  %s34_s19 = ssub.s32 %s780_s13, %s1020_s16 }
   0xb   : > { %p53_p5 = scmp.eq.s32.totalorder %s572_s15, 0  ;;  %p37_p6 = scmp.eq.s32.totalorder %s34_s19, 0 }
   0xc   : > { %p606_p8 = scmp.lt.s32.totalorder %s784_s14, 2  ;;  %s856_s22 = sand.u32 1, %s772_s11  }
   0xd   : > { %p847_p7 = por %p53_p5, %p52_p4  ;;  %s593_s23 = sshll.u32 %s780_s13, 4 }
   0xe   : > { %s853_s21 = scalar_select %p37_p6, %s772_s11, %s39_s17  }
   0xf   : > { %s576_s24 = sshll.u32 %s856_s22, 4  ;;  %s140_s27 = scalar_lea.hbm %s1004_s0, %s593_s23 }
  0x10   : > { %s141_s28 = sshll.u32 %s140_s27, 4  ;;  %s134_s29 = scalar_lea.vmem [#allocation3], %s576_s24  ;;  %s142_s28 = int_to_ptr.hbm [resolvable:$true] %s141_s28 }
  0x11   : > { %s143_s30 = sshll.u32 %s134_s29, 4  ;;  %p865_p9 = pnand %p606_p8, %p840_p3  ;;  %s144_s30 = int_to_ptr.vmem [resolvable:$true] %s143_s30 }
  0x12   : > { %p582_p10 = scmp.ge.s32.totalorder %s784_s14, 1  ;;  %p174_p11 = scmp.lt.s32.totalorder %s784_s14, 3 }
  0x13   : > { %s131_s4 = scalar_lea.sflag [#allocation4], %s856_s22  ;;  %s786_s5 = smov 128  }
  0x14   : > { %s787_s6 = smov 8   ;;  %p175_p12 = pnand %p582_p10, %p174_p11 }
  0x15   : > { %602 = dma.hbm_to_vmem [thread:$0]  (!%p865_p9), %s142_s28, 256, %s144_s30, %s131_s4, %s786_s5, %s786_s5, %s787_s6  }
  0x16   : > { %s163_s9 = scalar_lea.hbm %s1005_s1, %s593_s23  ;;  %s157_s17 = scalar_lea.vmem [#allocation5], %s576_s24 }
  0x17   : > { %s164_s15 = sshll.u32 %s163_s9, 4  ;;  %s166_s18 = sshll.u32 %s157_s17, 4  ;;  %s165_s15 = int_to_ptr.hbm [resolvable:$true] %s164_s15  ;;  %s167_s18 = int_to_ptr.vmem [resolvable:$true] %s166_s18 }
  0x18   : > { %s154_s19 = scalar_lea.sflag [#allocation6], %s856_s22  ;;  %178 = sbr.rel (%p175_p12) target bundleno = 217 (0xd9), region = 28 }
  0x19   : > { %605 = dma.hbm_to_vmem [thread:$0]  (!%p865_p9), %s165_s15, 256, %s167_s18, %s154_s19, %s786_s5, %s786_s5, %s787_s6  }
  0x1a   : > { %s180_s25 = sand.u32 (!%p175_p12), 1, %s768_s10  }
  0x1b   : > { %s583_s26 = sshll.u32 (!%p175_p12), %s180_s25, 4  ;;  %s181_s27 = scalar_lea.sflag (!%p175_p12), [#allocation4], %s180_s25 }
  0x1c   : > { %s184_s28 = scalar_lea.vmem (!%p175_p12), [#allocation3], %s583_s26 }
  0x1d   : > { %755 = dma.done.wait (%p847_p7), %s181_s27, 256  }
  0x1e   : > { %757 = vsyncadd (%p847_p7), %s181_s27, 4294967040  ;;  %s191_s23 = scalar_lea.sflag [#allocation6], %s180_s25  ;;  %s194_s24 = scalar_lea.vmem [#allocation5], %s583_s26 }
  0x1f   : > { %759 = dma.done.wait (%p847_p7), %s191_s23, 256  }
  0x20   : > { %761 = vsyncadd (%p847_p7), %s191_s23, 4294967040  ;;  %vm233_vm0 = vcmask 392192   ;;  %v788_v0 = vmov 0.0   ;;  %v895_v1 = vld [vmem:[%s194_s24 + $0x8] sm:$0xff]  ;;  %v898_v2 = vld [vmem:[%s194_s24] sm:$0xff]  ;;  %s585_s20 = sshll.u32 %s776_s12, 1 }
  0x21   : > { %237 = vst.msk [vmem:[#allocation2 + $0x18] sm:$0xff] %vm233_vm0, %v788_v0  ;;  %v900_v3 = vld [vmem:[%s184_s28] sm:$0xff]  ;;  %vm332_vm2 = vcmp.gt.f32.partialorder %v898_v2, 0.0  ;;  %v905_v5 = vld [vmem:[%s184_s28 + $0x8] sm:$0xff]  ;;  %vm333_vm3 = vcmp.gt.f32.partialorder %v895_v1, 0.0  ;;  %vm448_vm15 = vcmask 7168  }
  0x22   : > { %234 = vst.msk [vmem:[#allocation2] sm:$0xff] %vm233_vm0, %v788_v0  ;;  %vm326_vm1 = vcmp.gt.f32.partialorder %v900_v3, 0.0  ;;  %vm327_vm4 = vcmp.gt.f32.partialorder %v905_v5, 0.0  ;;  %v589_v8 = vsel %vm332_vm2, 1.0, %v788_v0  ;;  %v252_v9 = vand.u32 2147483647, %v900_v3 }
  0x23   : > { %235 = vst.msk [vmem:[#allocation2 + $0x8] sm:$0xff] %vm233_vm0, %v788_v0  ;;  %v587_v7 = vsel %vm326_vm1, 1.0, %v788_v0  ;;  %v588_v11 = vsel %vm327_vm4, 1.0, %v788_v0  ;;  %v590_v12 = vsel %vm333_vm3, 1.0, %v788_v0  ;;  %v253_v13 = vand.u32 2147483647, %v905_v5 }
  0x24   : > { %236 = vst.msk [vmem:[#allocation2 + $0x10] sm:$0xff] %vm233_vm0, %v788_v0  ;;  %v254_v15 = vsub.f32 0.0, %v252_v9  ;;  %v338_v16 = vmul.f32 %v589_v8, %v587_v7  ;;  %v339_v18 = vmul.f32 %v590_v12, %v588_v11  ;;  %v302_v58 = vmax.f32 %v900_v3, 0.0  ;;  %p224_p13 = scmp.lt.s32.totalorder %s585_s20, 3 }
  0x25   : > { %238 = vst.msk [vmem:[#allocation2 + $0x20] sm:$0xff] %vm233_vm0, %v788_v0  ;;  %v255_v17 = vsub.f32 0.0, %v253_v13  ;;  %v304_v59 = vmul.f32 %v898_v2, %v900_v3  ;;  %vm294_vm13 = vcmp.ge.f32.partialorder %v900_v3, 0.0  ;;  %vm295_vm14 = vcmp.ge.f32.partialorder %v905_v5, 0.0 }
  0x26   : > { %239 = vst.msk [vmem:[#allocation2 + $0x28] sm:$0xff] %vm233_vm0, %v788_v0  ;;  %v256_v19 = vmul.f32 1.442695, %v254_v15  ;;  %v318_v15 = vmul.f32 -0.5, %v898_v2  ;;  %vm451_vm1 = vcmask 15360   ;;  %vm454_vm2 = vcmask 23552  }
  0x27   : > { %240 = vst.msk [vmem:[#allocation2 + $0x30] sm:$0xff] %vm233_vm0, %v788_v0  ;;  %v258_v20 = vmul.f32 1.442695, %v255_v17  ;;  %s1022_s20 = smov (!%p224_p13, %s585_s20), 3  ;;  %vm460_vm3 = vcmask 39936   ;;  %vm463_vm4 = vcmask 48128  }
  0x28   : > { %v349_v4 = vld [vmem:[#allocation2 + $0x18] sm:$0xff]  ;;  %241 = vst.msk [vmem:[#allocation2 + $0x38] sm:$0xff] %vm233_vm0, %v788_v0  ;;  %658 = vpow2.f32 %v256_v19  ;;  %s586_s22 = sshll.u32 %s1022_s20, 3 }
  0x29   : > { %v351_v6 = vadd.f32 %v349_v4, %v895_v1  ;;  %242 = vst.msk [vmem:[#allocation2 + $0x40] sm:$0xff] %vm233_vm0, %v788_v0  ;;  %660 = vpow2.f32 %v258_v20  ;;  %s227_s30 = scalar_lea.vmem %s1006_s2, %s586_s22 }
  0x2a   : > { %243 = vst.msk [vmem:[#allocation2 + $0x48] sm:$0xff] %vm233_vm0, %v788_v0 }
  0x2b   : > { %353 = vst.msk [vmem:[#allocation2 + $0x18] sm:$0xff] %vm233_vm0, %v351_v6  ;;  %v348_v10 = vld [vmem:[#allocation2 + $0x10] sm:$0xff] }
  0x2c   : > { %244 = vst.msk [vmem:[#allocation2 + $0x50] sm:$0xff] %vm233_vm0, %v788_v0  ;;  %v350_v14 = vadd.f32 %v348_v10, %v898_v2  ;;  %v355_v19 = vld [vmem:[#allocation2 + $0x20] sm:$0xff] }
  0x2d   : > { %245 = vst.msk [vmem:[#allocation2 + $0x58] sm:$0xff] %vm233_vm0, %v788_v0 }
  0x2e   : > { %246 = vst.msk [vmem:[#allocation2 + $0x60] sm:$0xff] %vm233_vm0, %v788_v0  ;;  %v924_v29 = vpop.eup %658 }
  0x2f   : > { %247 = vst.msk [vmem:[#allocation2 + $0x68] sm:$0xff] %vm233_vm0, %v788_v0  ;;  %v927_v30 = vpop.eup %660  ;;  %v260_v32 = vadd.f32 1.0, %v924_v29  ;;  %v303_v0 = vmax.f32 %v905_v5, 0.0 }
  0x30   : > { %352 = vst.msk [vmem:[#allocation2 + $0x10] sm:$0xff] %vm233_vm0, %v350_v14  ;;  %v369_v21 = vld [vmem:[#allocation2 + $0x40] sm:$0xff]  ;;  %v261_v34 = vadd.f32 1.0, %v927_v30  ;;  %v306_v14 = vsub.f32 %v302_v58, %v304_v59 }
  0x31   : > { %v371_v22 = vadd.f32 %v369_v21, %v338_v16  ;;  %v370_v23 = vld [vmem:[#allocation2 + $0x48] sm:$0xff]  ;;  %662 = vrcp.f32 %v260_v32  ;;  %vm271_vm5 = vweird.f32 %v260_v32  ;;  %v277_v50 = vand.u32 2147483648, %v260_v32 }
  0x32   : > { %v401_v24 = vld [vmem:[#allocation2 + $0x18] sm:$0xff]  ;;  %v372_v25 = vadd.f32 %v370_v23, %v339_v18  ;;  %664 = vrcp.f32 %v261_v34  ;;  %v275_v53 = vand.u32 2147483647, %v260_v32  ;;  %v291_v54 = vand.u32 2147483648, %v261_v34 }
  0x33   : > { %v405_v26 = vsel %vm233_vm0, %v401_v24, 0.0  ;;  %373 = vst.msk [vmem:[#allocation2 + $0x40] sm:$0xff] %vm233_vm0, %v371_v22  ;;  %v376_v27 = vld [vmem:[#allocation2 + $0x50] sm:$0xff]  ;;  %666 = vlog2.f32 %v260_v32  ;;  %vm285_vm7 = vweird.f32 %v261_v34  ;;  %v289_v56 = vand.u32 2147483647, %v261_v34  ;;  %v356_v24 = vld [vmem:[#allocation2 + $0x28] sm:$0xff] }
  0x34   : > { %406 = vadd.xlane.f32.xlu1 %v405_v26  ;;  %v378_v28 = vadd.f32 %v589_v8, %v376_v27  ;;  %374 = vst.msk [vmem:[#allocation2 + $0x48] sm:$0xff] %vm233_vm0, %v372_v25  ;;  %v377_v39 = vld [vmem:[#allocation2 + $0x58] sm:$0xff]  ;;  %668 = vlog2.f32 %v261_v34  ;;  %v278_v62 = vor.u32 1.1754944e-38, %v277_v50  ;;  %vm276_vm10 = vcmp.eq.f32.partialorder %v275_v53, 8.507059e+37  ;;  %v340_v26 = vld [vmem:[#allocation2] sm:$0xff] }
  0x35   : > { %v379_v42 = vadd.f32 %v590_v12, %v377_v39  ;;  %v383_v45 = vld [vmem:[#allocation2 + $0x60] sm:$0xff]  ;;  %v305_v8 = vmul.f32 %v895_v1, %v905_v5  ;;  %vm290_vm12 = vcmp.eq.f32.partialorder %v289_v56, 8.507059e+37 }
  0x36   : > { %380 = vst.msk [vmem:[#allocation2 + $0x50] sm:$0xff] %vm233_vm0, %v378_v28  ;;  %v384_v44 = vld [vmem:[#allocation2 + $0x68] sm:$0xff]  ;;  %v385_v49 = vadd.f32 %v587_v7, %v383_v45  ;;  %v292_v7 = vor.u32 1.1754944e-38, %v291_v54 }
  0x37   : > { %v400_v31 = vld [vmem:[#allocation2 + $0x10] sm:$0xff]  ;;  %v663_v43 = vpop.eup %662  ;;  %381 = vst.msk [vmem:[#allocation2 + $0x58] sm:$0xff] %vm233_vm0, %v379_v42  ;;  %v386_v48 = vadd.f32 %v588_v11, %v384_v44  ;;  %v319_v11 = vmul.f32 -0.5, %v895_v1  ;;  %v307_v22 = vsub.f32 %v303_v0, %v305_v8 }
  0x38   : > { %v402_v33 = vsel %vm233_vm0, %v400_v31, 0.0  ;;  %v665_v46 = vpop.eup %664  ;;  %v267_v47 = vmul.f32 %v663_v43, %v260_v32  ;;  %vm272_vm6 = vweird.f32 %v663_v43  ;;  %387 = vst.msk [vmem:[#allocation2 + $0x60] sm:$0xff] %vm233_vm0, %v385_v49  ;;  %v320_v31 = vadd.f32 0.75, %v318_v15 }
  0x39   : > { %403 = vadd.xlane.f32.xlu0 %v402_v33  ;;  %v281_v51 = vmul.f32 %v665_v46, %v261_v34  ;;  %388 = vst.msk [vmem:[#allocation2 + $0x68] sm:$0xff] %vm233_vm0, %v386_v48  ;;  %vm286_vm8 = vweird.f32 %v665_v46  ;;  %v667_v60 = vpop.eup %666  ;;  %vm942_vm9 = vmor %vm271_vm5, %vm272_vm6  ;;  %v321_v27 = vadd.f32 0.75, %v319_v11  ;;  %v341_v34 = vld [vmem:[#allocation2 + $0x8] sm:$0xff]  ;;  %vm466_vm5 = vcmask 56320  }
  0x3a   : > { %v424_v35 = vld [vmem:[#allocation2 + $0x40] sm:$0xff]  ;;  %v268_v52 = vsub.f32 1.0, %v267_v47  ;;  %vm947_vm11 = vmor %vm285_vm7, %vm286_vm8  ;;  %v669_v9 = vpop.eup %668  ;;  %v263_v13 = vmul.f32 0.6931472, %v667_v60 }
  0x3b   : > { %v426_v36 = vsel %vm233_vm0, %v424_v35, 0.0  ;;  %v425_v37 = vld [vmem:[#allocation2 + $0x48] sm:$0xff]  ;;  %v282_v55 = vsub.f32 1.0, %v281_v51  ;;  %v265_v21 = vmul.f32 0.6931472, %v669_v9 }
  0x3c   : > { %427 = vadd.xlane.f32.xlu2 %v426_v36  ;;  %v429_v41 = vsel %vm233_vm0, %v425_v37, 0.0  ;;  %v269_v57 = vmul.f32 %v663_v43, %v268_v52  ;;  %v308_v28 = vadd.f32 %v306_v14, %v263_v13 }
  0x3d   : > { %v432_v38 = vld [vmem:[#allocation2 + $0x50] sm:$0xff]  ;;  %v283_v63 = vmul.f32 %v665_v46, %v282_v55  ;;  %v309_v36 = vadd.f32 %v307_v22, %v265_v21 }
  0x3e   : > { %v434_v40 = vsel %vm233_vm0, %v432_v38, 0.0  ;;  %v270_v4 = vadd.f32 %v663_v43, %v269_v57  ;;  %v322_v42 = vmul.f32 %v320_v31, %v308_v28 }
  0x3f   : > { %435 = vadd.xlane.f32.xlu1 %v434_v40  ;;  %v284_v10 = vadd.f32 %v665_v46, %v283_v63  ;;  %v433_v63 = vld [vmem:[#allocation2 + $0x58] sm:$0xff]  ;;  %v440_v0 = vld [vmem:[#allocation2 + $0x60] sm:$0xff] }
  0x40   : > { %v274_v12 = vsel %vm942_vm9, %v663_v43, %v270_v4  ;;  %v323_v43 = vmul.f32 %v321_v27, %v309_v36  ;;  %v437_v4 = vsel %vm233_vm0, %v433_v63, 0.0  ;;  %v441_v6 = vld [vmem:[#allocation2 + $0x68] sm:$0xff] }
  0x41   : > { %430 = vadd.xlane.f32.xlu0 %v429_v41  ;;  %v279_v16 = vsel %vm276_vm10, %v278_v62, %v274_v12  ;;  %v288_v17 = vsel %vm947_vm11, %v665_v46, %v284_v10  ;;  %v362_v46 = vld [vmem:[#allocation2 + $0x30] sm:$0xff]  ;;  %v445_v8 = vsel %vm233_vm0, %v441_v6, 0.0 }
  0x42   : > { %v296_v18 = vmul.f32 %v924_v29, %v279_v16  ;;  %v293_v20 = vsel %vm290_vm12, %v292_v7, %v288_v17  ;;  %v442_v7 = vsel %vm233_vm0, %v440_v0, 0.0 }
  0x43   : > { %v297_v23 = vmul.f32 %v927_v30, %v293_v20 }
  0x44   : > { %v298_v25 = vsel %vm294_vm13, %v279_v16, %v296_v18 }
  0x45   : > { %v310_v3 = vadd.f32 %v298_v25, %v898_v2  ;;  %v357_v32 = vadd.f32 %v355_v19, %v298_v25  ;;  %v299_v33 = vsel %vm295_vm14, %v293_v20, %v297_v23  ;;  %v300_v5 = vmul.f32 %v298_v25, %v898_v2 }
  0x46   : > { %v301_v29 = vmul.f32 %v299_v33, %v895_v1  ;;  %v358_v35 = vadd.f32 %v356_v24, %v299_v33  ;;  %v311_v37 = vadd.f32 %v299_v33, %v895_v1  ;;  %v363_v1 = vld [vmem:[#allocation2 + $0x38] sm:$0xff] }
  0x47   : > { %359 = vst.msk [vmem:[#allocation2 + $0x20] sm:$0xff] %vm233_vm0, %v357_v32  ;;  %v312_v30 = vmul.f32 2.0, %v300_v5  ;;  %v342_v38 = vadd.f32 %v340_v26, %v300_v5 }
  0x48   : > { %v313_v39 = vmul.f32 2.0, %v301_v29  ;;  %v343_v40 = vadd.f32 %v341_v34, %v301_v29  ;;  %360 = vst.msk [vmem:[#allocation2 + $0x28] sm:$0xff] %vm233_vm0, %v358_v35 }
  0x49   : > { %345 = vst.msk [vmem:[#allocation2] sm:$0xff] %vm233_vm0, %v342_v38  ;;  %v314_v41 = vsub.f32 %v310_v3, %v312_v30 }
  0x4a   : > { %346 = vst.msk [vmem:[#allocation2 + $0x8] sm:$0xff] %vm233_vm0, %v343_v40  ;;  %v315_v2 = vsub.f32 %v311_v37, %v313_v39 }
  0x4b   : > { %v316_v44 = vmul.f32 %v314_v41, %v314_v41 }
  0x4c   : > { %v317_v45 = vmul.f32 %v315_v2, %v315_v2 }
  0x4d   : > { %v324_v47 = vmul.f32 %v322_v42, %v316_v44 }
  0x4e   : > { %v408_v48 = vld [vmem:[#allocation2 + $0x20] sm:$0xff]  ;;  %v325_v49 = vmul.f32 %v323_v43, %v317_v45 }
  0x4f   : > { %v410_v50 = vsel %vm233_vm0, %v408_v48, 0.0  ;;  %v364_v51 = vadd.f32 %v362_v46, %v324_v47  ;;  %v409_v57 = vld [vmem:[#allocation2 + $0x28] sm:$0xff] }
  0x50   : > { %411 = vadd.xlane.f32.xlu2 %v410_v50  ;;  %v392_v52 = vld [vmem:[#allocation2] sm:$0xff]  ;;  %v365_v53 = vadd.f32 %v363_v1, %v325_v49  ;;  %v413_v58 = vsel %vm233_vm0, %v409_v57, 0.0 }
  0x51   : > { %v393_v54 = vld [vmem:[#allocation2 + $0x8] sm:$0xff]  ;;  %v394_v55 = vsel %vm233_vm0, %v392_v52, 0.0  ;;  %366 = vst.msk [vmem:[#allocation2 + $0x30] sm:$0xff] %vm233_vm0, %v364_v51 }
  0x52   : > { %v397_v56 = vsel %vm233_vm0, %v393_v54, 0.0  ;;  %395 = vadd.xlane.f32.xlu0 %v394_v55  ;;  %367 = vst.msk [vmem:[#allocation2 + $0x38] sm:$0xff] %vm233_vm0, %v365_v53 }
  0x53   : > { %398 = vadd.xlane.f32.xlu1 %v397_v56 }
  0x58   : > { %414 = vadd.xlane.f32.xlu2 %v413_v58  ;;  %v416_v59 = vld [vmem:[#allocation2 + $0x30] sm:$0xff] }
  0x59   : > { %v417_v60 = vld [vmem:[#allocation2 + $0x38] sm:$0xff]  ;;  %v418_v61 = vsel %vm233_vm0, %v416_v59, 0.0 }
  0x5a   : > { %v421_v62 = vsel %vm233_vm0, %v417_v60, 0.0  ;;  %419 = vadd.xlane.f32.xlu0 %v418_v61  ;;  %vm457_vm0 = vcmask 31744  }
  0x5b   : > { %422 = vadd.xlane.f32.xlu1 %v421_v62 }
  0x60   : > { %438 = vadd.xlane.f32.xlu2 %v437_v4 }
  0x62   : > { %443 = vadd.xlane.f32.xlu0 %v442_v7 }
  0x63   : > { %446 = vadd.xlane.f32.xlu1 %v445_v8 }
  0xa7   : > { %v407_v10 = vpop.xlane.xlu1 %406 }
  0xac   : > { %v404_v9 = vpop.xlane.xlu0 %403 }
  0xaf   : > { %v428_v11 = vpop.xlane.xlu2 %427 }
  0xb2   : > { %v436_v13 = vpop.xlane.xlu1 %435 }
  0xb4   : > { %v431_v12 = vpop.xlane.xlu0 %430 }
  0xc3   : > { %v412_v14 = vpop.xlane.xlu2 %411 }
  0xc5   : > { %v396_v15 = vpop.xlane.xlu0 %395 }
  0xc6   : > { %v399_v16 = vpop.xlane.xlu1 %398  ;;  %v449_v17 = vsel %vm448_vm15, %v396_v15, %v404_v9 }
  0xc7   : > { %v450_v19 = vsel %vm448_vm15, %v399_v16, %v407_v10  ;;  %v452_v23 = vsel %vm451_vm1, %v449_v17, %v412_v14 }
  0xcb   : > { %v415_v18 = vpop.xlane.xlu2 %414 }
  0xcc   : > { %v453_v20 = vsel %vm451_vm1, %v450_v19, %v415_v18 }
  0xcd   : > { %v420_v21 = vpop.xlane.xlu0 %419 }
  0xce   : > { %v423_v22 = vpop.xlane.xlu1 %422  ;;  %v455_v24 = vsel %vm454_vm2, %v452_v23, %v420_v21 }
  0xcf   : > { %v456_v25 = vsel %vm454_vm2, %v453_v20, %v423_v22  ;;  %v458_v26 = vsel %vm457_vm0, %v455_v24, %v428_v11 }
  0xd0   : > { %v459_v28 = vsel %vm457_vm0, %v456_v25, %v431_v12  ;;  %v461_v3 = vsel %vm460_vm3, %v458_v26, %v436_v13 }
  0xd3   : > { %v439_v27 = vpop.xlane.xlu2 %438 }
  0xd4   : > { %v462_v31 = vsel %vm460_vm3, %v459_v28, %v439_v27 }
  0xd5   : > { %v444_v32 = vpop.xlane.xlu0 %443 }
  0xd6   : > { %v447_v33 = vpop.xlane.xlu1 %446  ;;  %v464_v34 = vsel %vm463_vm4, %v461_v3, %v444_v32 }
  0xd7   : > { %v465_v5 = vsel %vm463_vm4, %v462_v31, %v447_v33  ;;  %467 = vst.msk [vmem:[%s227_s30] sm:$0xff] %vm466_vm5, %v464_v34 }
  0xd8   : > { %468 = vst.msk [vmem:[%s227_s30 + $0x8] sm:$0xff] %vm466_vm5, %v465_v5 }
  0xd9 PF: > { %s18_s14 = sadd.s32 1, %s784_s14   ;;  %s1014_s9 = smov %s768_s10 }
  0xda   : > { %p15_p0 = scmp.ge.s32.totalorder %s18_s14, 4   ;;  %s1015_s10 = smov %s772_s11 }
  0xdb   : > { %s1016_s11 = smov %s853_s21  ;;  %s1017_s12 = smov %s780_s13 }
  0xdc   : > { %s1018_s13 = smov %s1020_s16  ;;  %17 = sbr.rel (!%p15_p0) target bundleno = 6 (0x6), region = 95 }
  0xe1   :  { %491 = vsyncpa [#allocation4], 1 }
  0xe2   :  { %493 = vsyncpa [#allocation4 + $0x1], 1 }
  0xe3   :  { %494 = vsyncpa [#allocation6], 1 }
  0xe4   :  { %496 = vsyncpa [#allocation6 + $0x1], 1 }

</bundles_post_ra>
